<compile_context>
chip_gen: v7x
topology: tpu7x:2x2x1
jax: 0.10.0
libtpu: 0.0.40
codegen_flags: <defaults>
</compile_context>

<pallas_src>
import functools

import jax
import jax.numpy as jnp
from jax.experimental import pallas as pl
from jax.experimental.pallas import tpu as pltpu


def _focal_loss_kernel(logits_ref, side_ref, out_ref, *,
                       gamma: float, n_rows: int, tile_n: int):
    i = pl.program_id(0)

    logits = logits_ref[...].astype(jnp.float32)      # (T, C)  (bf16 streaming OK)
    side = side_ref[...]                              # (T, 2) f32
    tgt = side[:, 0:1].astype(jnp.int32)              # class idx (exact: idx << 2^24)
    w_t = side[:, 1:2]                                # weight[target]

    t_rows, n_cls = logits.shape

    # Numerically-stable log-sum-exp; the single per-element transcendental.
    row_max = jnp.max(logits, axis=-1, keepdims=True)                   # (T, 1)
    shifted = logits - row_max                                          # (T, C)
    e = jnp.exp(shifted)                                                # (T, C)

    if n_cls >= 512:
        # Wide C: denominator reduction on the (idle) MXU instead of the XLU.
        denom = jnp.dot(e, jnp.ones((n_cls, 1), jnp.float32),
                        preferred_element_type=jnp.float32)             # (T, 1)
    else:
        denom = jnp.sum(e, axis=-1, keepdims=True)                      # (T, 1)

    # Gather the target logit on the shifted values; row_max cancels in (lse - logit_t),
    # so no extra (T, C) cast/multiply is needed.
    col = jax.lax.broadcasted_iota(jnp.int32, (t_rows, n_cls), 1)       # (T, C)
    shifted_t = jnp.sum(jnp.where(col == tgt, shifted, 0.0),
                        axis=-1, keepdims=True)                          # (T, 1)

    # F.cross_entropy(..., reduction='none', weight=w): per-sample w[target] * NLL.
    ce = (jnp.log(denom) - shifted_t) * w_t                              # (T, 1)

    # focal_loss(ce, gamma): (1 - exp(-ce))**gamma * ce * 10
    p = jnp.exp(-ce)
    q = jnp.maximum(1.0 - p, 0.0)    # guard: tiny negative q would NaN under power()
    g_int = int(gamma)
    if float(g_int) == float(gamma) and 0 <= g_int <= 8:
        # Small integer gamma (incl. 0): explicit VPU multiplies, no transcendentals.
        factor = jnp.ones_like(q)
        for _ in range(g_int):
            factor = factor * q
    else:
        factor = jnp.power(q, gamma)
    per_sample = factor * ce * 10.0                                      # (T, 1)

    # Mask padded rows of the ragged last tile (padding content is unspecified).
    row = i * tile_n + jax.lax.broadcasted_iota(jnp.int32, (t_rows, 1), 0)
    per_sample = jnp.where(row < n_rows, per_sample, 0.0)

    # Per-tile partial sum, written lane-dense (unmasked vst); wrapper sums & divides.
    partial = jnp.sum(per_sample, keepdims=True)                         # (1, 1)
    out_ref[...] = jnp.broadcast_to(partial.reshape(1, 1, 1), (1, 1, 128))


def _vmem_plan():
    """Per-generation (per-buffer logits budget bytes, vmem_limit_bytes)."""
    vmem_cap = None
    try:
        info = pltpu.get_tpu_info()
        vmem_cap = getattr(info, "vmem_capacity_bytes", None)
    except Exception:
        vmem_cap = None
    if vmem_cap is None:
        vmem_cap = 64 * 1024 * 1024            # conservative (v7x-shaped) default
    if vmem_cap >= 96 * 1024 * 1024:           # v5e / v6e: 128 MiB physical VMEM
        return 12 * 1024 * 1024, 64 * 1024 * 1024
    return 6 * 1024 * 1024, 32 * 1024 * 1024   # v7x: 64 MiB physical per TC


def _choose_tile_n(n_rows: int, n_cols: int, itemsize: int,
                   budget_bytes: int, vmem_limit_bytes: int) -> int:
    padded_c = ((n_cols + 127) // 128) * 128   # lane-padded class width
    # Resident bytes per tile row while one tile computes:
    #   2x double-buffered streamed logits block
    # + ~3 f32 (T, C) temporaries (upcast logits, shifted, exp(shifted))
    # + 2x double-buffered lane-padded (T, 2)->(T, 128) sidecar
    per_row = 2 * padded_c * itemsize + 3 * padded_c * 4 + 2 * 128 * 4
    t_budget = budget_bytes // max(1, padded_c * itemsize)
    t_fit = max(16, (vmem_limit_bytes - (4 << 20)) // per_row)
    t = min(t_budget, t_fit, 16384)
    t = max(16, (t // 16) * 16)                # multiple of 16 -> legal for f32 and bf16
    return n_rows if t >= n_rows else t


def focal_loss_pallas(logits: jax.Array, target: jax.Array,
                      weight: jax.Array | None = None, gamma: float = 0.0,
                      tile_n: int | None = None,
                      stream_dtype=None) -> jax.Array:
    """FocalLoss(weight, gamma).forward(input=logits, target).

    stream_dtype: optional dtype (e.g. jnp.bfloat16) to stream logits from HBM in;
    the kernel upcasts to f32 internally. Leave None for exact f32 parity.
    """
    assert gamma >= 0
    N, C = logits.shape

    if stream_dtype is not None:
        logits = logits.astype(stream_dtype)   # halve HBM bytes on this HBM-bound op

    target = target.astype(jnp.int32)
    # Gather weight[target] outside the (N, C) hot path; merge with the (f32-encoded)
    # targets into one sidecar so only one lane-padded small block is streamed.
    if weight is None:
        w_t = jnp.ones((N,), jnp.float32)
    else:
        w_t = jnp.take(weight.astype(jnp.float32), target)
    side = jnp.stack([target.astype(jnp.float32), w_t], axis=1)          # (N, 2)

    budget_bytes, vmem_limit = _vmem_plan()
    itemsize = jnp.dtype(logits.dtype).itemsize
    if tile_n is None:
        tile_n = _choose_tile_n(N, C, itemsize, budget_bytes, vmem_limit)
    else:
        tile_n = int(tile_n)
        tile_n = N if tile_n >= N else max(16, (tile_n // 16) * 16)
    num_tiles = (N + tile_n - 1) // tile_n

    kernel = functools.partial(_focal_loss_kernel, gamma=float(gamma),
                               n_rows=N, tile_n=tile_n)

    partials = pl.pallas_call(
        kernel,
        out_shape=jax.ShapeDtypeStruct((num_tiles, 1, 128), jnp.float32),
        grid_spec=pltpu.PrefetchScalarGridSpec(
            num_scalar_prefetch=0,
            grid=(num_tiles,),
            in_specs=[
                pl.BlockSpec((tile_n, C), lambda i: (i, 0)),   # logits row tile
                pl.BlockSpec((tile_n, 2), lambda i: (i, 0)),   # [target_f32, w[target]]
            ],
            out_specs=pl.BlockSpec((1, 1, 128), lambda i: (i, 0, 0)),  # per-tile partial
        ),
        compiler_params=pltpu.CompilerParams(
            dimension_semantics=("parallel",),       # disjoint outputs -> megacore OK
            vmem_limit_bytes=vmem_limit,
        ),
    )(logits, side)

    return jnp.sum(partials[:, 0, 0]) / jnp.float32(N)


def focal_loss_ref(logits, target, weight, gamma):
    # Pure-JAX reference of the PyTorch semantics, for sanity checking.
    N, C = logits.shape
    if weight is None:
        weight = jnp.ones((C,), jnp.float32)
    logp = jax.nn.log_softmax(logits.astype(jnp.float32), axis=-1)
    nll = -jnp.take_along_axis(logp, target.reshape(N, 1), axis=1)[:, 0]
    ce = nll * weight[target]
    p = jnp.exp(-ce)
    return jnp.mean(jnp.power(1.0 - p, gamma) * ce * 10.0)


if __name__ == "__main__":
    key = jax.random.PRNGKey(0)
    k_logits, k_tgt, k_logits2, k_tgt2 = jax.random.split(key, 4)

    # Small (N, C) classification problem; N chosen so the tiled path (including a
    # ragged last tile) is exercised.
    N, C = 100, 32
    logits = jax.random.normal(k_logits, (N, C), dtype=jnp.float32)
    target = jax.random.randint(k_tgt, (N,), 0, C, dtype=jnp.int32)
    weight = 0.5 + jnp.arange(C, dtype=jnp.float32) / C   # deterministic class weights

    # 1) Weighted, integer gamma (q*q fast path), forced multi-tile grid + ragged tile,
    #    per-tile partial-sum output path with 7 parallel tiles.
    out1 = jax.block_until_ready(
        focal_loss_pallas(logits, target, weight, gamma=2.0, tile_n=16))
    ref1 = focal_loss_ref(logits, target, weight, 2.0)
    assert jnp.allclose(out1, ref1, rtol=1e-4, atol=1e-4), (out1, ref1)

    # 2) Unweighted, non-integer gamma (clamped power fallback), auto tile size.
    out2 = jax.block_until_ready(
        focal_loss_pallas(logits, target, None, gamma=1.5))
    ref2 = focal_loss_ref(logits, target, None, 1.5)
    assert jnp.allclose(out2, ref2, rtol=1e-4, atol=1e-4), (out2, ref2)

    # 3) Wide-C (MXU denominator path) with bf16 logit streaming; reference is computed
    #    on the same bf16-quantized logits so the comparison isolates kernel arithmetic.
    N3, C3 = 64, 512
    logits3 = jax.random.normal(k_logits2, (N3, C3), dtype=jnp.float32)
    target3 = jax.random.randint(k_tgt2, (N3,), 0, C3, dtype=jnp.int32)
    weight3 = 0.25 + jnp.arange(C3, dtype=jnp.float32) / C3
    out3 = jax.block_until_ready(
        focal_loss_pallas(logits3, target3, weight3, gamma=2.0,
                          stream_dtype=jnp.bfloat16))
    logits3_q = logits3.astype(jnp.bfloat16).astype(jnp.float32)
    ref3 = focal_loss_ref(logits3_q, target3, weight3, 2.0)
    assert jnp.allclose(out3, ref3, rtol=1e-3, atol=1e-3), (out3, ref3)

    print("KERNEL_OK")
</pallas_src>

<mosaic_0001>
module attributes {stable_mosaic.version = 11 : i64} {
  func.func @_focal_loss_kernel(%arg0: i32, %arg1: memref<16x32xf32, #tpu.memory_space<vmem>>, %arg2: memref<16x2xf32, #tpu.memory_space<vmem>>, %arg3: memref<1x1x128xf32, #tpu.memory_space<vmem>>) attributes {dimension_semantics = [#tpu.dimension_semantics<parallel>], iteration_bounds = array<i64: 7>, scalar_prefetch = 0 : i64, scratch_operands = 0 : i64, tpu.core_type = #tpu.core_type<tc>, window_params = [{transform_indices = @transform_0, window_bounds = array<i64: 16, 32>}, {transform_indices = @transform_1, window_bounds = array<i64: 16, 2>}, {transform_indices = @transform_2, window_bounds = array<i64: 1, 1, 128>}]} {
    %c0 = arith.constant 0 : index
    %c0_0 = arith.constant 0 : index
    %0 = vector.load %arg1[%c0, %c0_0] : memref<16x32xf32, #tpu.memory_space<vmem>>, vector<16x32xf32>
    %c0_1 = arith.constant 0 : index
    %c0_2 = arith.constant 0 : index
    %1 = vector.load %arg2[%c0_1, %c0_2] : memref<16x2xf32, #tpu.memory_space<vmem>>, vector<16x2xf32>
    %2 = vector.extract_strided_slice %1 {offsets = [0, 0], sizes = [16, 1], strides = [1, 1]} : vector<16x2xf32> to vector<16x1xf32>
    %3 = arith.fptosi %2 : vector<16x1xf32> to vector<16x1xi32>
    %4 = vector.extract_strided_slice %1 {offsets = [0, 1], sizes = [16, 1], strides = [1, 1]} : vector<16x2xf32> to vector<16x1xf32>
    %cst = arith.constant dense<0xFF800000> : vector<16xf32>
    %5 = vector.multi_reduction <maximumf>, %0, %cst [1] : vector<16x32xf32> to vector<16xf32>
    %6 = vector.shape_cast %5 : vector<16xf32> to vector<16x1xf32>
    %7 = vector.broadcast %6 : vector<16x1xf32> to vector<16x32xf32>
    %8 = arith.subf %0, %7 : vector<16x32xf32>
    %9 = math.exp %8 : vector<16x32xf32>
    %cst_3 = arith.constant dense<0.000000e+00> : vector<16xf32>
    %10 = vector.multi_reduction <add>, %9, %cst_3 [1] : vector<16x32xf32> to vector<16xf32>
    %11 = vector.shape_cast %10 : vector<16xf32> to vector<16x1xf32>
    %12 = tpu.iota {dimensions = array<i32: 1>} : vector<16x32xi32>
    %13 = vector.broadcast %3 : vector<16x1xi32> to vector<16x32xi32>
    %14 = arith.cmpi eq, %12, %13 : vector<16x32xi32>
    %cst_4 = arith.constant 0.000000e+00 : f32
    %15 = vector.broadcast %cst_4 : f32 to vector<16x32xf32>
    %16 = arith.select %14, %8, %15 : vector<16x32xi1>, vector<16x32xf32>
    %cst_5 = arith.constant dense<0.000000e+00> : vector<16xf32>
    %17 = vector.multi_reduction <add>, %16, %cst_5 [1] : vector<16x32xf32> to vector<16xf32>
    %18 = vector.shape_cast %17 : vector<16xf32> to vector<16x1xf32>
    %19 = math.log %11 : vector<16x1xf32>
    %20 = arith.subf %19, %18 : vector<16x1xf32>
    %21 = arith.mulf %20, %4 : vector<16x1xf32>
    %cst_6 = arith.constant 0.000000e+00 : f32
    %22 = vector.broadcast %cst_6 : f32 to vector<16x1xf32>
    %23 = arith.subf %22, %21 : vector<16x1xf32>
    %24 = math.exp %23 : vector<16x1xf32>
    %cst_7 = arith.constant 1.000000e+00 : f32
    %25 = vector.broadcast %cst_7 : f32 to vector<16x1xf32>
    %26 = arith.subf %25, %24 : vector<16x1xf32>
    %cst_8 = arith.constant 0.000000e+00 : f32
    %27 = vector.broadcast %cst_8 : f32 to vector<16x1xf32>
    %28 = arith.maximumf %26, %27 : vector<16x1xf32>
    %cst_9 = arith.constant 1.000000e+00 : f32
    %29 = vector.broadcast %cst_9 : f32 to vector<16x1xf32>
    %30 = arith.mulf %29, %28 : vector<16x1xf32>
    %31 = arith.mulf %30, %28 : vector<16x1xf32>
    %32 = arith.mulf %31, %21 : vector<16x1xf32>
    %cst_10 = arith.constant 1.000000e+01 : f32
    %33 = vector.broadcast %cst_10 : f32 to vector<16x1xf32>
    %34 = arith.mulf %32, %33 : vector<16x1xf32>
    %c16_i32 = arith.constant 16 : i32
    %35 = arith.muli %arg0, %c16_i32 : i32
    %36 = tpu.iota {dimensions = array<i32: 0>} : vector<16x1xi32>
    %37 = vector.broadcast %35 : i32 to vector<16x1xi32>
    %38 = arith.addi %37, %36 : vector<16x1xi32>
    %c100_i32 = arith.constant 100 : i32
    %39 = vector.broadcast %c100_i32 : i32 to vector<16x1xi32>
    %40 = arith.cmpi slt, %38, %39 : vector<16x1xi32>
    %cst_11 = arith.constant 0.000000e+00 : f32
    %41 = vector.broadcast %cst_11 : f32 to vector<16x1xf32>
    %42 = arith.select %40, %34, %41 : vector<16x1xi1>, vector<16x1xf32>
    %43 = vector.shape_cast %42 : vector<16x1xf32> to vector<1x16x1xf32>
    %cst_12 = arith.constant dense<0.000000e+00> : vector<1xf32>
    %44 = vector.multi_reduction <add>, %43, %cst_12 [1, 2] : vector<1x16x1xf32> to vector<1xf32>
    %45 = vector.shape_cast %44 : vector<1xf32> to vector<1x1x1xf32>
    %46 = vector.extract %45[0, 0, 0] : f32 from vector<1x1x1xf32>
    %47 = vector.broadcast %46 : f32 to vector<1x1xf32>
    %48 = vector.shape_cast %47 : vector<1x1xf32> to vector<1x1x1xf32>
    %49 = vector.shape_cast %48 : vector<1x1x1xf32> to vector<1x1x1xf32>
    %50 = vector.broadcast %49 : vector<1x1x1xf32> to vector<1x1x128xf32>
    %c0_13 = arith.constant 0 : index
    %c0_14 = arith.constant 0 : index
    %c0_15 = arith.constant 0 : index
    %51 = vector.load %arg3[%c0_13, %c0_14, %c0_15] : memref<1x1x128xf32, #tpu.memory_space<vmem>>, vector<1x1x128xf32>
    tpu.vector_store %arg3[%c0_13, %c0_14, %c0_15], %50 {strides = array<i32>} : memref<1x1x128xf32, #tpu.memory_space<vmem>>, vector<1x1x128xf32>,
    return
  }
  func.func @transform_0(%arg0: i32) -> (i32, i32) {
    %c0_i32 = arith.constant 0 : i32
    %c0_i32_0 = arith.constant 0 : i32
    return %arg0, %c0_i32 : i32, i32
  }
  func.func @transform_1(%arg0: i32) -> (i32, i32) {
    %c0_i32 = arith.constant 0 : i32
    %c0_i32_0 = arith.constant 0 : i32
    return %arg0, %c0_i32 : i32, i32
  }
  func.func @transform_2(%arg0: i32) -> (i32, i32, i32) {
    %c0_i32 = arith.constant 0 : i32
    %c0_i32_0 = arith.constant 0 : i32
    %c0_i32_1 = arith.constant 0 : i32
    return %arg0, %c0_i32, %c0_i32_0 : i32, i32, i32
  }
}

</mosaic_0001>

<bundles_post_ra>
// kernel: tpu_custom_call.1
= control target key start
LH: loop header
LB: loop body
LE: loop exit
PB: predicated region body
PF: predicated region fallthrough
CT: control target
= control target key end

     0   :  { %7 = vsyncpa [#allocation3], 0  ;;  %s653_s0 = inlined_call_operand.vmem [shape: f32[100,32], index: 0, kind: input, shape index: {}]   ;;  %s654_s1 = inlined_call_operand.vmem [shape: f32[100,2], index: 1, kind: input, shape index: {}]   ;;  %s655_s2 = inlined_call_operand.hbm [shape: f32[7,1,128], index: 2, kind: output, shape index: {}]  }
   0x1   :  { %9 = vsyncpa [#allocation3 + $0x1], 0  ;;  %s541_s9 = smov 0   ;;  %s543_s10 = smov 0  }
   0x2   :  { %s545_s11 = smov 0   ;;  %s547_s12 = smov 0  }
   0x3 LB: > { %s562_s13 = sadd.s32 4294967295, %s521_s12   ;;  %s386_s14 = sadd.s32 4294967294, %s521_s12   ;;  %s521_s12 = sphi %s547_s12, %s661_s12   ;;  %s517_s11 = sphi %s545_s11, %s660_s11   ;;  %s513_s10 = sphi %s543_s10, %s659_s10   ;;  %s509_s9 = sphi %s541_s9, %s658_s9  }
   0x4   : > { %s566_s15 = sadd.s32 1, %s521_s12   ;;  %s74_s16 = sadd.s32 1, %s517_s11 }
   0x5   : > { %s71_s17 = ssub.s32 %s521_s12, %s566_s15  ;;  %p84_p0 = scmp.ne.s32.totalorder %s517_s11, %s513_s10 }
   0x6   : > { %p72_p1 = scmp.eq.s32.totalorder %s71_s17, 0  ;;  %p85_p2 = scmp.eq.s32.totalorder %s562_s13, 6 }
   0x7   : > { %p90_p3 = scmp.ne.s32.totalorder %s513_s10, %s509_s9  ;;  %p91_p4 = scmp.eq.s32.totalorder %s386_s14, 6 }
   0x8   : > { %s577_s18 = scalar_select %p72_p1, %s517_s11, %s74_s16  }
   0x9   : > { %p579_p5 = por %p85_p2, %p84_p0  ;;  %p583_p6 = por %p91_p4, %p90_p3 }
   0xa   : > { %p389_p7 = scmp.ge.s32.totalorder %s521_s12, 1  ;;  %p143_p8 = scmp.lt.s32.totalorder %s521_s12, 8 }
   0xc   : > { %p144_p9 = pnand %p389_p7, %p143_p8 }
   0xd   : > { %s390_s21 = sshll.u32 (!%p144_p9), %s562_s13, 1  ;;  %v523_v0 = vmov (!%p144_p9), 0   ;;  %vm211_vm0 = vcmask (!%p144_p9), 261120   ;;  %v230_v16 = vlaneseq (!%p144_p9)  ;;  %s394_s29 = sshll.u32 (!%p144_p9), %s562_s13, 4  ;;  %vm291_vm5 = vcmask (!%p144_p9), 7168  }
   0xe   : > { %147 = sbr.rel (%p144_p9) target bundleno = 710 (0x2c6), region = 28  ;;  %p182_p10 = scmp.lt.s32.totalorder (!%p144_p9), %s390_s21, 12  ;;  %445 = vset.pattern.permute.xlu1 (!%p144_p9), %v523_v0  ;;  %446 = vset.pattern.permute.xlu0 (!%p144_p9), %v523_v0  ;;  %v276_v48 = vstv (!%p144_p9), %s394_s29 }
   0xf   : > { %v231_v19 = vand.u32 (!%p144_p9), 127, %v230_v16  ;;  %v274_v46 = vshrl.u32 (!%p144_p9), %v230_v16, 7  ;;  %s524_s30 = smov (!%p144_p9), 127   ;;  %s175_s3 = sand.u32 (!%p144_p9), 1, %s513_s10  }
  0x10   : > { %s176_s4 = scalar_lea.vmem (!%p144_p9), [#allocation2], %s175_s3  ;;  %s613_s14 = scalar_lea.hbm (!%p144_p9), %s655_s2, %s394_s29 }
  0x11   : > { %v277_v51 = vadd.s32 (!%p144_p9), %v276_v48, %v274_v46  ;;  %v275_v52 = vadd.s32 (!%p144_p9), 8, %v274_v46  ;;  %s319_s5 = sshll.u32 (!%p144_p9), %s176_s4, 4  ;;  %s307_s16 = scalar_lea.sflag (!%p144_p9), [#allocation3], %s175_s3  ;;  %s606_s5 = int_to_ptr.vmem [resolvable:$true] %s319_s5 }
  0x12   : > { %s459_s17 = scalar_lea.vmem (!%p144_p9), %s606_s5, 16 }
  0x13   : > { %vm279_vm3 = vcmp.lt.s32.totalorder (!%p144_p9), %v277_v51, 100  ;;  %v278_v57 = vadd.s32 (!%p144_p9), %v276_v48, %v275_v52  ;;  %p460_p11 = scmp.ne.s32.totalorder (!%p144_p9), %s606_s5, %s459_s17 }
  0x15   : > { %s663_s21 = smov (!%p182_p10, %s390_s21), 12  ;;  %vm280_vm4 = vcmp.lt.s32.totalorder %v278_v57, 100  ;;  %p461_p12 = pnand %p460_p11, %p579_p5 }
  0x16   : > { %s391_s22 = sshll.u32 %s663_s21, 3  ;;  %s525_s21 = smov [#allocation2]  }
  0x17   : > { %s185_s25 = scalar_lea.vmem %s653_s0, %s391_s22  ;;  %s199_s28 = scalar_lea.vmem %s654_s1, %s391_s22 }
  0x18   : > { %v205_v1 = vld [vmem:[%s185_s25] sm:$0xff]  ;;  %v208_v2 = vld [vmem:[%s199_s28 + $0x8] sm:$0xff]  ;;  %p462_p13 = pneg %p461_p12  ;;  %s463_s22 = sshll.u32 %s525_s21, 4  ;;  %s464_s22 = int_to_ptr.vmem [resolvable:$false] %s463_s22 }
  0x19   : > { %v206_v3 = vld [vmem:[%s185_s25 + $0x8] sm:$0xff]  ;;  %v212_v4 = vsel %vm211_vm0, %v205_v1, -inf  ;;  %v207_v5 = vld [vmem:[%s199_s28] sm:$0xff]  ;;  %v400_v7 = vtrunc.f32 %v208_v2  ;;  %s465_s23 = scalar_lea.vmem %s464_s22, 32  ;;  %p466_p0 = scmp.lt.s32.totalorder %s606_s5, %s464_s22 }
  0x1a   : > { %213 = vmax.xlane.f32.xlu0 %v212_v4  ;;  %v398_v6 = vtrunc.f32 %v207_v5  ;;  %v215_v8 = vsel %vm211_vm0, %v206_v3, -inf  ;;  %p467_p1 = scmp.lt.s32.totalorder %s465_s23, %s459_s17 }
  0x1b   : > { %v401_v10 = vcvt.f32.s32 %v400_v7 }
  0x1c   : > { %v399_v9 = vcvt.f32.s32 %v398_v6  ;;  %p468_p2 = por %p467_p1, %p466_p0 }
  0x1e   : > { %216 = vmax.xlane.f32.xlu0 %v215_v8  ;;  %233 = vperm.xlu1 %445, %v399_v9   ;;  %p469_p3 = pnand %p468_p2, %p462_p13 }
  0x22   : > { %236 = vperm.xlu1 %445, %v401_v10  }
  0x9d   : > { %v234_v18 = vpop.permute.xlu1 %233 }
  0x9e   : > { %vm238_vm1 = vcmp.eq.s32.totalorder %v231_v19, %v234_v18 }
  0xa1   : > { %v237_v21 = vpop.permute.xlu1 %236 }
  0xa2   : > { %vm239_vm2 = vcmp.eq.s32.totalorder %v231_v19, %v237_v21 }
  0xa7   : > { %v214_v11 = vpop.xlane.xlu0 %213 }
  0xa8   : > { %v218_v12 = vsub.f32 %v205_v1, %v214_v11 }
  0xaa   : > { %v220_v13 = vmul.f32 1.442695, %v218_v12  ;;  %v240_v23 = vsel %vm238_vm1, %v218_v12, 0.0 }
  0xab   : > { %v217_v14 = vpop.xlane.xlu0 %216  ;;  %v242_v25 = vsel %vm211_vm0, %v240_v23, 0.0 }
  0xac   : > { %447 = vpow2.f32 %v220_v13  ;;  %v219_v15 = vsub.f32 %v206_v3, %v217_v14 }
  0xae   : > { %v222_v17 = vmul.f32 1.442695, %v219_v15  ;;  %v241_v27 = vsel %vm239_vm2, %v219_v15, 0.0 }
  0xaf   : > { %v245_v28 = vsel %vm211_vm0, %v241_v27, 0.0 }
  0xb0   : > { %449 = vpow2.f32 %v222_v17 }
  0xb6   : > { %v448_v20 = vpop.eup %447 }
  0xb7   : > { %v224_v22 = vsel %vm211_vm0, %v448_v20, 0.0 }
  0xb8   : > { %225 = vadd.xlane.f32.xlu0 %v224_v22 }
  0xba   : > { %v450_v24 = vpop.eup %449 }
  0xbb   : > { %v227_v26 = vsel %vm211_vm0, %v450_v24, 0.0 }
  0xbc   : > { %243 = vadd.xlane.f32.xlu0 %v242_v25  ;;  %228 = vadd.xlane.f32.xlu1 %v227_v26 }
  0xc0   : > { %246 = vadd.xlane.f32.xlu0 %v245_v28 }
 0x145   : > { %v226_v29 = vpop.xlane.xlu0 %225 }
 0x146   : > { %451 = vlog2.f32 %v226_v29 }
 0x149   : > { %v229_v30 = vpop.xlane.xlu1 %228  ;;  %v244_v32 = vpop.xlane.xlu0 %243 }
 0x14a   : > { %453 = vlog2.f32 %v229_v30 }
 0x14d   : > { %v247_v38 = vpop.xlane.xlu0 %246 }
 0x150   : > { %v452_v31 = vpop.eup %451 }
 0x151   : > { %v249_v33 = vmul.f32 0.6931472, %v452_v31 }
 0x153   : > { %v252_v34 = vsub.f32 %v249_v33, %v244_v32 }
 0x154   : > { %v454_v35 = vpop.eup %453 }
 0x155   : > { %v254_v36 = vmul.f32 %v252_v34, %v207_v5  ;;  %v251_v37 = vmul.f32 0.6931472, %v454_v35 }
 0x157   : > { %v256_v39 = vsub.f32 0.0, %v254_v36  ;;  %v253_v40 = vsub.f32 %v251_v37, %v247_v38 }
 0x159   : > { %v258_v41 = vmul.f32 1.442695, %v256_v39  ;;  %v255_v42 = vmul.f32 %v253_v40, %v208_v2 }
 0x15b   : > { %455 = vpow2.f32 %v258_v41  ;;  %v257_v43 = vsub.f32 0.0, %v255_v42 }
 0x15d   : > { %v260_v44 = vmul.f32 1.442695, %v257_v43 }
 0x15f   : > { %457 = vpow2.f32 %v260_v44 }
 0x165   : > { %v456_v45 = vpop.eup %455 }
 0x166   : > { %v262_v47 = vsub.f32 1.0, %v456_v45 }
 0x168   : > { %v264_v49 = vmax.f32 %v262_v47, 0.0 }
 0x169   : > { %v458_v50 = vpop.eup %457 }
 0x16a   : > { %v266_v53 = vmul.f32 %v264_v49, %v264_v49  ;;  %v263_v54 = vsub.f32 1.0, %v458_v50 }
 0x16c   : > { %v268_v55 = vmul.f32 %v266_v53, %v254_v36  ;;  %v265_v56 = vmax.f32 %v263_v54, 0.0 }
 0x16e   : > { %v270_v58 = vmul.f32 10.0, %v268_v55  ;;  %v267_v59 = vmul.f32 %v265_v56, %v265_v56 }
 0x170   : > { %v281_v60 = vsel %vm279_vm3, %v270_v58, 0.0  ;;  %v269_v61 = vmul.f32 %v267_v59, %v255_v42 }
 0x171   : > { %285 = vrot.lane.b32.xlu0 %v281_v60, %s524_s30 }
 0x172   : > { %v271_v62 = vmul.f32 10.0, %v269_v61 }
 0x174   : > { %v282_v63 = vsel %vm280_vm4, %v271_v62, 0.0 }
 0x175   : > { %287 = vrot.lane.b32.xlu0 %v282_v63, %s524_s30 }
 0x1e3   : > { %v286_v0 = vpop.permute.xlu0 %285 }
 0x1e4   : > { %v292_v2 = vsel %vm291_vm5, %v286_v0, 0.0 }
 0x1e7   : > { %v288_v1 = vpop.permute.xlu0 %287 }
 0x1e8   : > { %v293_v3 = vsel %vm291_vm5, %v288_v1, 0.0 }
 0x1e9   : > { %v294_v4 = vadd.f32 %v293_v3, %v292_v2 }
 0x1eb   : > { %295 = vadd.xlane.f32.xlu1 %v294_v4 }
 0x278   : > { %v296_v5 = vpop.xlane.xlu1 %295 }
 0x279   : > { %v297_v6 = vrot.slane %v296_v5, 4 }
 0x27b   : > { %v298_v7 = vadd.f32 %v297_v6, %v296_v5 }
 0x27d   : > { %v299_v8 = vrot.slane %v298_v7, 2 }
 0x27f   : > { %v300_v9 = vadd.f32 %v299_v8, %v298_v7 }
 0x281   : > { %v301_v10 = vrot.slane %v300_v9, 1 }
 0x283   : > { %v302_v11 = vadd.f32 %v301_v10, %v300_v9 }
 0x285   : > { %402 = vpush %v302_v11 }
 0x2b6   : > { %s403_s6 = spop %402 }
 0x2b7   : > { %v304_v12 = vstv %s403_s6 }
 0x2b8   : > { %305 = vst [vmem:[%s176_s4] sm:$0x1] %v304_v12 }
 0x2b9   : > { %472 = shalt.err (!%p469_p3)
}
 0x2ba   : > { %s473_s13 = scalar_lea.hbm %s613_s14, 16  ;;  %s477_s26 = scalar_lea.hbm %s655_s2, 112 }
 0x2bb   : > { %p474_p4 = scmp.ne.s32.totalorder %s613_s14, %s473_s13  ;;  %p478_p9 = scmp.lt.u32.totalorder %s613_s14, %s655_s2 }
 0x2bc   : > { %p479_p10 = scmp.lt.u32.totalorder %s477_s26, %s473_s13  ;;  %p481_p12 = scmp.lt.u32.totalorder %s473_s13, %s613_s14 }
 0x2bd   : > { %p475_p7 = pnand %p474_p4, %p579_p5 }
 0x2be   : > { %p480_p11 = por %p479_p10, %p478_p9 }
 0x2bf   : > { %p476_p8 = pneg %p475_p7 }
 0x2c0   : > { %p482_p13 = por %p481_p12, %p480_p11 }
 0x2c2   : > { %p483_p0 = pnand %p482_p13, %p476_p8 }
 0x2c4   : > { %486 = shalt.err (!%p483_p0)
}
 0x2c5   : > { %404 = dma.vmem_to_hbm [thread:$0]  (%p579_p5), %s606_s5, 16, %s613_s14, %s307_s16  }
 0x2c6 PF: > { %p410_p1 = scmp.ge.s32.totalorder %s521_s12, 2  ;;  %s331_s29 = sand.u32 1, %s509_s9  }
 0x2c7   : > { %s332_s30 = scalar_lea.sflag [#allocation3], %s331_s29 }
 0x2c8   : > { %p407_p2 = pnand %p410_p1, %p583_p6 }
 0x2ca   : > { %504 = dma.done.wait (!%p407_p2), %s332_s30, 16  }
 0x2cb   : > { %506 = vsyncadd (!%p407_p2), %s332_s30, 4294967280  ;;  %p12_p3 = scmp.ge.s32.totalorder %s566_s15, 9   ;;  %s658_s9 = smov %s513_s10 }
 0x2cc   : > { %s659_s10 = smov %s517_s11  ;;  %s660_s11 = smov %s577_s18 }
 0x2cd   : > { %s661_s12 = smov %s566_s15  ;;  %14 = sbr.rel (!%p12_p3) target bundleno = 3 (0x3), region = 66 }
 0x2d4   :  { %336 = vsyncpa [#allocation3], 1 }
 0x2d5   :  { %338 = vsyncpa [#allocation3 + $0x1], 1 }

</bundles_post_ra>
